<compile_context>
chip_gen: v6e
topology: v6e:2x2x1
jax: 0.10.0
libtpu: 0.0.40
codegen_flags: <defaults>
</compile_context>

<pallas_src>
import functools
import math

import jax
import jax.numpy as jnp
from jax.experimental import pallas as pl
from jax.experimental.pallas import tpu as pltpu

BN_EPS = 1e-5


def _round_up(x, m):
    return ((x + m - 1) // m) * m


def _gate_dtype():
    """bf16 gating on chips with a bf16 VPU/EUP (v6e / v7x); f32 otherwise."""
    try:
        kind = jax.devices()[0].device_kind.lower()
    except Exception:
        return jnp.float32
    return jnp.bfloat16 if ("v6" in kind or "v7" in kind) else jnp.float32


# ----------------------------------------------------------------------------
# Pallas kernel: fused (filter|gate) dilated conv + BN + gating, fused
# (skip|res) 1x1 conv + BN, residual add.  Everything lives on lane-dense
# (channels, columns) slabs where column c = n*L' + t (t = position within
# the dilated sequence); column c is a *valid* conv output iff t >= K-1.
# ----------------------------------------------------------------------------
def _residual_block_kernel(xpad_ref, wfg_ref, wsr_ref, gb_ref, mask_ref,
                           out_ref, skip_ref, *, k_taps, cd, cs, m_valid,
                           gate_dtype):
    # xpad: (Cr, Min)  bf16  input slab with K-1 leading zero columns, so the
    #                        tap-k operand is the static lane view [:, k:k+Mp]
    # wfg : (K, 2Cd, Cr) bf16 per-tap fused filter|gate conv weights
    # wsr : (Cs+Cr, Cd)  bf16 fused skip|res 1x1 conv weights
    # gb  : (2Cd+Cs+Cr, 2) f32 packed BatchNorm gamma (col 0) / beta (col 1)
    # mask: (Mp, 1)      f32  1.0 on valid output columns, 0.0 elsewhere
    mp = out_ref.shape[1]
    inv_m = 1.0 / m_valid                     # static python constant
    mask = mask_ref[...]                      # (Mp, 1)

    def bn_train(y, gamma, beta):
        # Training-mode BatchNorm1d over the valid columns only.  Per-channel
        # sums are (rows, Mp) @ (Mp, 1) matmuls -> MXU (idle anyway), keeping
        # the XLU free; invalid (cross-batch / lane-pad) columns carry mask=0.
        # Two-pass (centered) variance avoids E[y^2]-E[y]^2 cancellation.
        mean = jnp.dot(y, mask, preferred_element_type=jnp.float32) * inv_m
        centered = y - mean
        var = jnp.dot(centered * centered, mask,
                      preferred_element_type=jnp.float32) * inv_m
        return centered * jax.lax.rsqrt(var + BN_EPS) * gamma + beta

    # ---- fused filter|gate dilated conv: K accumulated MXU matmuls over
    #      lane-shifted views of the single input slab ------------------------
    xfull = xpad_ref[...]                                     # (Cr, Min) bf16
    taps = [xfull[:, k:k + mp] for k in range(k_taps)]        # (Cr, Mp) views
    y = jnp.dot(wfg_ref[0], taps[0], preferred_element_type=jnp.float32)
    for k in range(1, k_taps):
        y = y + jnp.dot(wfg_ref[k], taps[k],
                        preferred_element_type=jnp.float32)   # (2Cd, Mp) f32

    gb = gb_ref[...]                                          # (Ctot, 2) f32
    y = bn_train(y, gb[:2 * cd, 0:1], gb[:2 * cd, 1:2])

    # ---- gating: bf16 on chips with a bf16 VPU/EUP, f32 otherwise -----------
    yg = y.astype(gate_dtype)
    hidden = jnp.tanh(yg[:cd, :]) * jax.nn.sigmoid(yg[cd:, :])
    hidden = hidden.astype(wsr_ref.dtype)                     # (Cd, Mp) bf16

    # ---- fused skip|res 1x1 conv + BN ---------------------------------------
    z = jnp.dot(wsr_ref[...], hidden,
                preferred_element_type=jnp.float32)           # (Cs+Cr, Mp) f32
    z = bn_train(z, gb[2 * cd:, 0:1], gb[2 * cd:, 1:2])

    skip_ref[...] = z[:cs, :].astype(skip_ref.dtype)          # bf16 skip out
    # Residual add: the k = K-1 view of the input slab IS x at the output
    # columns (bf16-rounded residual — documented precision deviation).
    out_ref[...] = z[cs:, :] + taps[k_taps - 1].astype(jnp.float32)


# ----------------------------------------------------------------------------
# WaveNet `dilate` batch reshuffle (pytorch-wavenet, pad_start=True) — pure
# pad/reshape/transpose glue, kept in JAX outside the kernel.
# ----------------------------------------------------------------------------
def dilate(x, dilation, init_dilation=1):
    """(N, C, L) -> (N', C, L') batch-dilation reshuffle."""
    n, c, l = x.shape
    dilation_factor = dilation / init_dilation
    if dilation_factor == 1:
        return x
    new_l = int(round(math.ceil(l / dilation_factor) * dilation_factor))
    if new_l != l:
        x = jnp.pad(x, ((0, 0), (0, 0), (new_l - l, 0)))  # pad at start of L
        l = new_l
    l_new = int(math.ceil(l * init_dilation / dilation))
    n_new = int(math.ceil(n * dilation / init_dilation))
    x = jnp.transpose(x, (1, 2, 0)).reshape(c, l_new, n_new)   # (c, l', n')
    return jnp.transpose(x, (2, 0, 1))                          # (n', c, l')


def _dilate_to_cnl(x, dilation, init_dilation=1):
    """Same reshuffle but returns (C, N', L') directly so the kernel gets
    channels on sublanes without an extra wrapper transpose."""
    n, c, l = x.shape
    dilation_factor = dilation / init_dilation
    if dilation_factor == 1:
        return jnp.transpose(x, (1, 0, 2))
    new_l = int(round(math.ceil(l / dilation_factor) * dilation_factor))
    if new_l != l:
        x = jnp.pad(x, ((0, 0), (0, 0), (new_l - l, 0)))
        l = new_l
    l_new = int(math.ceil(l * init_dilation / dilation))
    n_new = int(math.ceil(n * dilation / init_dilation))
    x = jnp.transpose(x, (1, 2, 0)).reshape(c, l_new, n_new)   # (c, l', n')
    return jnp.transpose(x, (0, 2, 1))                          # (c, n', l')


# ----------------------------------------------------------------------------
# Forward wrapper
# ----------------------------------------------------------------------------
@functools.partial(jax.jit, static_argnums=(2, 3, 4))
def residual_block_forward(params, inputs, dilation, init_dilation, kernel_size):
    """inputs: (N, res_channels, L) in PyTorch NCL layout.  Returns
    (outputs, skip) matching ResidualBlock.forward with training-mode
    (batch-statistics) BatchNorm.  `skip` is returned in bf16 (halves the
    kernel's output HBM bytes; the next layer's MXU consumes bf16 anyway)."""
    K = kernel_size
    assert params['wf'].shape[2] == K
    Cd = params['wf'].shape[0]
    Cs = params['ws'].shape[0]

    x_cnl = _dilate_to_cnl(inputs, dilation, init_dilation)   # (Cr, N', L')
    Cr, N, L = x_cnl.shape
    Lout = L - K + 1
    assert Lout >= 1
    NL = N * L
    M_valid = N * Lout
    Mp = _round_up(NL, 128)                        # lane-dense output width
    Min = _round_up(Mp + K - 1, 128)               # input width (K-1 lead zeros)

    # Single bf16 input slab with K-1 leading zero columns so every tap k is
    # the static lane view xpad[:, k:k+Mp] inside the kernel (no K-times
    # im2col tensor in HBM, and no separate residual input).
    x2 = x_cnl.reshape(Cr, NL)
    xpad = jnp.pad(x2, ((0, 0), (K - 1, Min - NL - (K - 1)))).astype(jnp.bfloat16)

    # Valid-column mask over the Mp output columns (column c = n*L' + t is a
    # real conv output iff t >= K-1); doubles as the BN-stats reduction vector.
    col = jnp.arange(Mp, dtype=jnp.int32)
    valid = (col < NL) & ((col % L) >= (K - 1))
    mask = valid.astype(jnp.float32)[:, None]                  # (Mp, 1)

    # Fused weights.  PyTorch Conv1d weight is (Cout, Cin, K).
    wfg = jnp.transpose(
        jnp.concatenate([params['wf'], params['wg']], axis=0),  # (2Cd, Cr, K)
        (2, 0, 1)).astype(jnp.bfloat16)                          # (K, 2Cd, Cr)
    wsr = jnp.concatenate([params['ws'][:, :, 0], params['wr'][:, :, 0]],
                          axis=0).astype(jnp.bfloat16)           # (Cs+Cr, Cd)
    # NOTE: conv biases (bf/bg/bs/br) are intentionally unused — a per-channel
    # constant is exactly cancelled by the train-mode BatchNorm mean
    # subtraction that immediately follows each conv.
    gb = jnp.stack(
        [jnp.concatenate([params['gf'], params['gg'],
                          params['gs'], params['gr']]),
         jnp.concatenate([params['betaf'], params['betag'],
                          params['betas'], params['betar']])],
        axis=1)                                                  # (Ctot, 2) f32

    out2, skip2 = pl.pallas_call(
        functools.partial(_residual_block_kernel, k_taps=K, cd=Cd, cs=Cs,
                          m_valid=M_valid, gate_dtype=_gate_dtype()),
        out_shape=(jax.ShapeDtypeStruct((Cr, Mp), jnp.float32),     # residual
                   jax.ShapeDtypeStruct((Cs, Mp), jnp.bfloat16)),   # skip
        in_specs=[pl.BlockSpec(memory_space=pltpu.MemorySpace.VMEM)] * 5,
        out_specs=(pl.BlockSpec(memory_space=pltpu.MemorySpace.VMEM),
                   pl.BlockSpec(memory_space=pltpu.MemorySpace.VMEM)),
    )(xpad, wfg, wsr, gb, mask)

    # Drop lane padding and the K-1 invalid leading positions of each row.
    out3 = out2[:, :NL].reshape(Cr, N, L)[:, :, K - 1:]        # (Cr, N', Lout)
    skip3 = skip2[:, :NL].reshape(Cs, N, L)[:, :, K - 1:]      # (Cs, N', Lout)
    outputs = jnp.transpose(out3, (1, 0, 2))                   # (N', Cr, Lout) f32
    skip = jnp.transpose(skip3, (1, 0, 2))                     # (N', Cs, Lout) bf16

    if Lout != 1:
        # The reference un-dilates `hidden` before the 1x1 skip conv.  With
        # dilation=1 that un-dilate never pads (ceil(Lout*d)/d == Lout), so it
        # is a pure (batch, time) permutation which commutes exactly with the
        # pointwise conv + global-batch-stats BN done inside the kernel.
        df = 1.0 / dilation
        assert int(round(math.ceil(Lout / df) * df)) == Lout
        skip = dilate(skip, 1, init_dilation=dilation)
    return outputs, skip


# ----------------------------------------------------------------------------
# Pure-JAX f32 reference of the PyTorch forward (for a loose parity check).
# ----------------------------------------------------------------------------
def _reference_forward(params, inputs, dilation, init_dilation, kernel_size):
    x = dilate(inputs, dilation, init_dilation)

    def conv1d(v, w, b):
        y = jax.lax.conv_general_dilated(
            v, w, window_strides=(1,), padding='VALID',
            dimension_numbers=('NCH', 'OIH', 'NCH'),
            precision=jax.lax.Precision.HIGHEST)
        return y + b[None, :, None]

    def bn(y, gamma, beta):
        mean = jnp.mean(y, axis=(0, 2), keepdims=True)
        var = jnp.var(y, axis=(0, 2), keepdims=True)
        return ((y - mean) * jax.lax.rsqrt(var + BN_EPS)
                * gamma[None, :, None] + beta[None, :, None])

    tanh_out = jnp.tanh(bn(conv1d(x, params['wf'], params['bf']),
                           params['gf'], params['betaf']))
    sig_out = jax.nn.sigmoid(bn(conv1d(x, params['wg'], params['bg']),
                                params['gg'], params['betag']))
    hidden = sig_out * tanh_out
    skip = hidden
    if hidden.shape[2] != 1:
        skip = dilate(hidden, 1, init_dilation=dilation)
    skip_out = bn(conv1d(skip, params['ws'], params['bs']),
                  params['gs'], params['betas'])
    res_out = bn(conv1d(hidden, params['wr'], params['br']),
                 params['gr'], params['betar'])
    outputs = res_out + x[:, :, kernel_size - 1:]
    return outputs, skip_out


# ----------------------------------------------------------------------------
# Deterministic synthetic parameters (PyTorch-style Conv1d init, BN affine).
# ----------------------------------------------------------------------------
def init_params(key, res_channels, dilation_channels, skip_channels, kernel_size):
    ks = jax.random.split(key, 4)

    def conv_init(k, cin, cout, ksize):
        bound = 1.0 / math.sqrt(cin * ksize)
        kw, kb = jax.random.split(k)
        w = jax.random.uniform(kw, (cout, cin, ksize), jnp.float32, -bound, bound)
        b = jax.random.uniform(kb, (cout,), jnp.float32, -bound, bound)
        return w, b

    wf, bf = conv_init(ks[0], res_channels, dilation_channels, kernel_size)
    wg, bg = conv_init(ks[1], res_channels, dilation_channels, kernel_size)
    ws, bs = conv_init(ks[2], dilation_channels, skip_channels, 1)
    wr, br = conv_init(ks[3], dilation_channels, res_channels, 1)

    ones = lambda c: jnp.ones((c,), jnp.float32)
    zeros = lambda c: jnp.zeros((c,), jnp.float32)
    return dict(
        wf=wf, bf=bf, wg=wg, bg=bg, ws=ws, bs=bs, wr=wr, br=br,
        gf=ones(dilation_channels), betaf=zeros(dilation_channels),
        gg=ones(dilation_channels), betag=zeros(dilation_channels),
        gs=ones(skip_channels), betas=zeros(skip_channels),
        gr=ones(res_channels), betar=zeros(res_channels),
    )


if __name__ == "__main__":
    key = jax.random.PRNGKey(0)
    k_in, k_par = jax.random.split(key)

    # Small shapes consistent with the module.
    batch, res_channels, dilation_channels, skip_channels = 2, 8, 8, 16
    kernel_size, seq_len = 2, 16
    dilation, init_dilation = 2, 1

    inputs = jax.random.normal(k_in, (batch, res_channels, seq_len), jnp.float32)
    params = init_params(k_par, res_channels, dilation_channels,
                         skip_channels, kernel_size)

    outputs, skip = residual_block_forward(params, inputs, dilation,
                                           init_dilation, kernel_size)
    jax.block_until_ready((outputs, skip))

    lout = seq_len // dilation - (kernel_size - 1)
    assert outputs.shape == (batch * dilation, res_channels, lout)
    assert skip.shape == (batch, skip_channels, lout * dilation)

    # Loose-tolerance parity against a pure-JAX f32 reference of the PyTorch
    # forward (bf16 MXU operands / gating / bf16 skip output -> ~1e-2 level).
    ref_out, ref_skip = _reference_forward(params, inputs, dilation,
                                           init_dilation, kernel_size)
    err_out = float(jnp.max(jnp.abs(outputs - ref_out)))
    err_skip = float(jnp.max(jnp.abs(skip.astype(jnp.float32) - ref_skip)))
    assert err_out < 0.25 and err_skip < 0.25, (err_out, err_skip)
    print("KERNEL_OK")
</pallas_src>

<mosaic_0001>
module attributes {stable_mosaic.version = 11 : i64} {
  func.func @_residual_block_kernel(%arg0: memref<8x256xbf16, #tpu.memory_space<vmem>>, %arg1: memref<2x16x8xbf16, #tpu.memory_space<vmem>>, %arg2: memref<24x8xbf16, #tpu.memory_space<vmem>>, %arg3: memref<40x2xf32, #tpu.memory_space<vmem>>, %arg4: memref<128x1xf32, #tpu.memory_space<vmem>>, %arg5: memref<8x128xf32, #tpu.memory_space<vmem>>, %arg6: memref<16x128xbf16, #tpu.memory_space<vmem>>) attributes {dimension_semantics = [], scalar_prefetch = 0 : i64, scratch_operands = 0 : i64, tpu.core_type = #tpu.core_type<tc>} {
    %c0 = arith.constant 0 : index
    %c0_0 = arith.constant 0 : index
    %0 = vector.load %arg4[%c0, %c0_0] : memref<128x1xf32, #tpu.memory_space<vmem>>, vector<128x1xf32>
    %c0_1 = arith.constant 0 : index
    %c0_2 = arith.constant 0 : index
    %1 = vector.load %arg0[%c0_1, %c0_2] : memref<8x256xbf16, #tpu.memory_space<vmem>>, vector<8x256xbf16>
    %2 = vector.extract_strided_slice %1 {offsets = [0, 0], sizes = [8, 128], strides = [1, 1]} : vector<8x256xbf16> to vector<8x128xbf16>
    %3 = vector.extract_strided_slice %1 {offsets = [0, 1], sizes = [8, 128], strides = [1, 1]} : vector<8x256xbf16> to vector<8x128xbf16>
    %c0_3 = arith.constant 0 : index
    %c0_4 = arith.constant 0 : index
    %c0_5 = arith.constant 0 : index
    %4 = vector.load %arg1[%c0_3, %c0_4, %c0_5] : memref<2x16x8xbf16, #tpu.memory_space<vmem>>, vector<1x16x8xbf16>
    %5 = vector.shape_cast %4 : vector<1x16x8xbf16> to vector<16x8xbf16>
    %cst = arith.constant dense<0.000000e+00> : vector<16x128xf32>
    %6 = tpu.matmul %5, %2, %cst {dimension_numbers = #tpu.dot_dimension_numbers<[1], [0], [0], [1], [0, 0, 1, 1], [], []>} : vector<16x8xbf16>, vector<8x128xbf16>, vector<16x128xf32> -> vector<16x128xf32>
    %c1 = arith.constant 1 : index
    %c0_6 = arith.constant 0 : index
    %c0_7 = arith.constant 0 : index
    %7 = vector.load %arg1[%c1, %c0_6, %c0_7] : memref<2x16x8xbf16, #tpu.memory_space<vmem>>, vector<1x16x8xbf16>
    %8 = vector.shape_cast %7 : vector<1x16x8xbf16> to vector<16x8xbf16>
    %cst_8 = arith.constant dense<0.000000e+00> : vector<16x128xf32>
    %9 = tpu.matmul %8, %3, %cst_8 {dimension_numbers = #tpu.dot_dimension_numbers<[1], [0], [0], [1], [0, 0, 1, 1], [], []>} : vector<16x8xbf16>, vector<8x128xbf16>, vector<16x128xf32> -> vector<16x128xf32>
    %10 = arith.addf %6, %9 : vector<16x128xf32>
    %c0_9 = arith.constant 0 : index
    %c0_10 = arith.constant 0 : index
    %11 = vector.load %arg3[%c0_9, %c0_10] : memref<40x2xf32, #tpu.memory_space<vmem>>, vector<40x2xf32>
    %12 = vector.extract_strided_slice %11 {offsets = [0, 0], sizes = [16, 1], strides = [1, 1]} : vector<40x2xf32> to vector<16x1xf32>
    %13 = vector.extract_strided_slice %11 {offsets = [0, 1], sizes = [16, 1], strides = [1, 1]} : vector<40x2xf32> to vector<16x1xf32>
    %cst_11 = arith.constant dense<0.000000e+00> : vector<16x1xf32>
    %14 = tpu.matmul %10, %0, %cst_11 {dimension_numbers = #tpu.dot_dimension_numbers<[1], [0], [0], [1], [0, 0, 1, 1], [], []>} : vector<16x128xf32>, vector<128x1xf32>, vector<16x1xf32> -> vector<16x1xf32>
    %cst_12 = arith.constant 0.0357142873 : f32
    %15 = vector.broadcast %cst_12 : f32 to vector<16x1xf32>
    %16 = arith.mulf %14, %15 : vector<16x1xf32>
    %17 = vector.broadcast %16 : vector<16x1xf32> to vector<16x128xf32>
    %18 = arith.subf %10, %17 : vector<16x128xf32>
    %19 = arith.mulf %18, %18 : vector<16x128xf32>
    %cst_13 = arith.constant dense<0.000000e+00> : vector<16x1xf32>
    %20 = tpu.matmul %19, %0, %cst_13 {dimension_numbers = #tpu.dot_dimension_numbers<[1], [0], [0], [1], [0, 0, 1, 1], [], []>} : vector<16x128xf32>, vector<128x1xf32>, vector<16x1xf32> -> vector<16x1xf32>
    %cst_14 = arith.constant 0.0357142873 : f32
    %21 = vector.broadcast %cst_14 : f32 to vector<16x1xf32>
    %22 = arith.mulf %20, %21 : vector<16x1xf32>
    %cst_15 = arith.constant 9.99999974E-6 : f32
    %23 = vector.broadcast %cst_15 : f32 to vector<16x1xf32>
    %24 = arith.addf %22, %23 : vector<16x1xf32>
    %25 = math.rsqrt %24 : vector<16x1xf32>
    %26 = vector.broadcast %25 : vector<16x1xf32> to vector<16x128xf32>
    %27 = arith.mulf %18, %26 : vector<16x128xf32>
    %28 = vector.broadcast %12 : vector<16x1xf32> to vector<16x128xf32>
    %29 = arith.mulf %27, %28 : vector<16x128xf32>
    %30 = vector.broadcast %13 : vector<16x1xf32> to vector<16x128xf32>
    %31 = arith.addf %29, %30 : vector<16x128xf32>
    %32 = vector.extract_strided_slice %31 {offsets = [0, 0], sizes = [8, 128], strides = [1, 1]} : vector<16x128xf32> to vector<8x128xf32>
    %33 = math.tanh %32 : vector<8x128xf32>
    %34 = vector.extract_strided_slice %31 {offsets = [8, 0], sizes = [8, 128], strides = [1, 1]} : vector<16x128xf32> to vector<8x128xf32>
    %35 = arith.negf %34 : vector<8x128xf32>
    %36 = math.exp %35 : vector<8x128xf32>
    %cst_16 = arith.constant 1.000000e+00 : f32
    %37 = vector.broadcast %cst_16 : f32 to vector<8x128xf32>
    %38 = arith.addf %37, %36 : vector<8x128xf32>
    %39 = arith.divf %37, %38 : vector<8x128xf32>
    %40 = arith.mulf %33, %39 : vector<8x128xf32>
    %41 = arith.truncf %40 : vector<8x128xf32> to vector<8x128xbf16>
    %c0_17 = arith.constant 0 : index
    %c0_18 = arith.constant 0 : index
    %42 = vector.load %arg2[%c0_17, %c0_18] : memref<24x8xbf16, #tpu.memory_space<vmem>>, vector<24x8xbf16>
    %cst_19 = arith.constant dense<0.000000e+00> : vector<24x128xf32>
    %43 = tpu.matmul %42, %41, %cst_19 {dimension_numbers = #tpu.dot_dimension_numbers<[1], [0], [0], [1], [0, 0, 1, 1], [], []>} : vector<24x8xbf16>, vector<8x128xbf16>, vector<24x128xf32> -> vector<24x128xf32>
    %44 = vector.extract_strided_slice %11 {offsets = [16, 0], sizes = [24, 1], strides = [1, 1]} : vector<40x2xf32> to vector<24x1xf32>
    %45 = vector.extract_strided_slice %11 {offsets = [16, 1], sizes = [24, 1], strides = [1, 1]} : vector<40x2xf32> to vector<24x1xf32>
    %cst_20 = arith.constant dense<0.000000e+00> : vector<24x1xf32>
    %46 = tpu.matmul %43, %0, %cst_20 {dimension_numbers = #tpu.dot_dimension_numbers<[1], [0], [0], [1], [0, 0, 1, 1], [], []>} : vector<24x128xf32>, vector<128x1xf32>, vector<24x1xf32> -> vector<24x1xf32>
    %cst_21 = arith.constant 0.0357142873 : f32
    %47 = vector.broadcast %cst_21 : f32 to vector<24x1xf32>
    %48 = arith.mulf %46, %47 : vector<24x1xf32>
    %49 = vector.broadcast %48 : vector<24x1xf32> to vector<24x128xf32>
    %50 = arith.subf %43, %49 : vector<24x128xf32>
    %51 = arith.mulf %50, %50 : vector<24x128xf32>
    %cst_22 = arith.constant dense<0.000000e+00> : vector<24x1xf32>
    %52 = tpu.matmul %51, %0, %cst_22 {dimension_numbers = #tpu.dot_dimension_numbers<[1], [0], [0], [1], [0, 0, 1, 1], [], []>} : vector<24x128xf32>, vector<128x1xf32>, vector<24x1xf32> -> vector<24x1xf32>
    %cst_23 = arith.constant 0.0357142873 : f32
    %53 = vector.broadcast %cst_23 : f32 to vector<24x1xf32>
    %54 = arith.mulf %52, %53 : vector<24x1xf32>
    %cst_24 = arith.constant 9.99999974E-6 : f32
    %55 = vector.broadcast %cst_24 : f32 to vector<24x1xf32>
    %56 = arith.addf %54, %55 : vector<24x1xf32>
    %57 = math.rsqrt %56 : vector<24x1xf32>
    %58 = vector.broadcast %57 : vector<24x1xf32> to vector<24x128xf32>
    %59 = arith.mulf %50, %58 : vector<24x128xf32>
    %60 = vector.broadcast %44 : vector<24x1xf32> to vector<24x128xf32>
    %61 = arith.mulf %59, %60 : vector<24x128xf32>
    %62 = vector.broadcast %45 : vector<24x1xf32> to vector<24x128xf32>
    %63 = arith.addf %61, %62 : vector<24x128xf32>
    %64 = vector.extract_strided_slice %63 {offsets = [0, 0], sizes = [16, 128], strides = [1, 1]} : vector<24x128xf32> to vector<16x128xf32>
    %65 = arith.truncf %64 : vector<16x128xf32> to vector<16x128xbf16>
    %c0_25 = arith.constant 0 : index
    %c0_26 = arith.constant 0 : index
    %66 = vector.load %arg6[%c0_25, %c0_26] : memref<16x128xbf16, #tpu.memory_space<vmem>>, vector<16x128xbf16>
    tpu.vector_store %arg6[%c0_25, %c0_26], %65 {strides = array<i32>} : memref<16x128xbf16, #tpu.memory_space<vmem>>, vector<16x128xbf16>,
    %67 = vector.extract_strided_slice %63 {offsets = [16, 0], sizes = [8, 128], strides = [1, 1]} : vector<24x128xf32> to vector<8x128xf32>
    %68 = arith.extf %3 : vector<8x128xbf16> to vector<8x128xf32>
    %69 = arith.addf %67, %68 : vector<8x128xf32>
    %c0_27 = arith.constant 0 : index
    %c0_28 = arith.constant 0 : index
    %70 = vector.load %arg5[%c0_27, %c0_28] : memref<8x128xf32, #tpu.memory_space<vmem>>, vector<8x128xf32>
    tpu.vector_store %arg5[%c0_27, %c0_28], %69 {strides = array<i32>} : memref<8x128xf32, #tpu.memory_space<vmem>>, vector<8x128xf32>,
    return
  }
}

</mosaic_0001>

<bundles_post_ra>
// kernel: residual_block_forward.1
= control target key start
LH: loop header
LB: loop body
LE: loop exit
PB: predicated region body
PF: predicated region fallthrough
CT: control target
= control target key end

     0   :  { %vm65_vm0 = vcmask 1043456   ;;  %v1039_v1 = vmov 0.0   ;;  %vm1040_vm1 = vmmov 0   ;;  %vm61_vm2 = vcmask 64512   ;;  %s1041_s26 = smov 127   ;;  %s1376_s0 = inlined_call_operand.vmem [shape: bf16[8,256], index: 0, kind: input, shape index: {}]   ;;  %s1377_s1 = inlined_call_operand.vmem [shape: bf16[2,16,8], index: 1, kind: input, shape index: {}]   ;;  %s1378_s4 = inlined_call_operand.vmem [shape: f32[128,1], index: 4, kind: input, shape index: {}]   ;;  %s1379_s3 = inlined_call_operand.vmem [shape: f32[40,2], index: 3, kind: input, shape index: {}]   ;;  %s1380_s2 = inlined_call_operand.vmem [shape: bf16[24,8], index: 2, kind: input, shape index: {}]   ;;  %s1381_s6 = inlined_call_operand.vmem [shape: bf16[16,128], index: 6, kind: output, shape index: {1}]   ;;  %s1382_s5 = inlined_call_operand.vmem [shape: f32[8,128], index: 5, kind: output, shape index: {0}]  }
   0x1   :  { %v1082_v0 = vld [vmem:[%s1376_s0] sm:$0xff]  ;;  %834 = vmatprep.subr.bf16.mxu1 %v1039_v1  ;;  %836 = vmatprep.mubr.msk.bf16.mxu1 %vm1040_vm1, %v1039_v1  ;;  %v1100_v5 = vld [vmem:[%s1378_s4 + $0x78] sm:$0xff]  ;;  %v1110_v7 = vld [vmem:[%s1378_s4 + $0x70] sm:$0xff]  ;;  %vm59_vm3 = vcmask 1039360   ;;  %v1042_v37 = vmov 0   ;;  %v1043_v49 = vmov 1  }
   0x2   :  { %v728_v2 = vcombine.low %v1082_v0, %v1082_v0  ;;  %v119_v3 = vsel %vm65_vm0, %v1082_v0, 0  ;;  %v1019_v4 = vld [vmem:[%s1377_s1] sm:$0xff]   ;;  %828 = vmatprep.subr.bf16.mxu0 %v1039_v1  ;;  %830 = vmatprep.mubr.msk.bf16.mxu0 %vm1040_vm1, %v1039_v1  ;;  %v729_v6 = vcombine.high %v1082_v0, %v1082_v0  ;;  %v1118_v8 = vld [vmem:[%s1378_s4 + $0x68] sm:$0xff]  ;;  %v1132_v10 = vld [vmem:[%s1378_s4 + $0x58] sm:$0xff] }
   0x3   :  { %835 = vmatpush3.bf16.msra.mxu1 %v119_v3  ;;  %v1125_v9 = vld [vmem:[%s1378_s4 + $0x60] sm:$0xff]  ;;  %v1139_v11 = vld [vmem:[%s1378_s4 + $0x50] sm:$0xff]  ;;  %v1146_v12 = vld [vmem:[%s1378_s4 + $0x48] sm:$0xff]  ;;  %1004 = vset.pattern.permute.xlu1 %v1042_v37 }
   0x4   :  { %55 = vrot.lane.b32.xlu0 %v728_v2, %s1041_s26  ;;  %875 = vmatprep.subr.mxu1 %v1100_v5  ;;  %v1153_v13 = vld [vmem:[%s1378_s4 + $0x40] sm:$0xff]  ;;  %v1160_v14 = vld [vmem:[%s1378_s4 + $0x38] sm:$0xff]  ;;  %v1167_v15 = vld [vmem:[%s1378_s4 + $0x30] sm:$0xff] }
   0x5   :  { %v1175_v16 = vld [vmem:[%s1378_s4 + $0x28] sm:$0xff]  ;;  %v1181_v17 = vld [vmem:[%s1378_s4 + $0x20] sm:$0xff]  ;;  %v1188_v18 = vld [vmem:[%s1378_s4 + $0x18] sm:$0xff]  ;;  %1005 = vset.pattern.permute.xlu0 %v1042_v37 }
   0x6   :  { %837 = vmatmul.mubr.msk.bf16.vlgmr.msra.gmra.mxu1 %vm61_vm2, %v1019_v4  ;;  %v1020_v23 = vld [vmem:[%s1377_s1 + $0x8] sm:$0xff]   ;;  %v1228_v24 = vld [vmem:[%s1378_s4 + $0x10] sm:$0xff]  ;;  %v1245_v26 = vld [vmem:[%s1378_s4] sm:$0xff] }
   0x7   :  { %876 = vmatpush3.msra.mxu1 %v1100_v5  ;;  %v1236_v25 = vld [vmem:[%s1378_s4 + $0x8] sm:$0xff]  ;;  %v162_v50 = vld [vmem:[%s1379_s3] sm:$0xff] }
   0x8   :  { %57 = vrot.lane.b32.xlu0 %v729_v6, %s1041_s26  ;;  %877 = vmatprep.subr.mxu1 %v1110_v7  ;;  %v163_v42 = vld [vmem:[%s1379_s3 + $0x8] sm:$0xff]  ;;  %v1021_v59 = vld [vmem:[%s1380_s2] sm:$0xff]  }
   0x9   :  { %878 = vmatpush3.msra.mxu1 %v1110_v7 }
   0xa   :  { %879 = vmatprep.subr.mxu1 %v1118_v8 }
   0xb   :  { %880 = vmatpush3.msra.mxu1 %v1118_v8 }
   0xc   :  { %881 = vmatprep.subr.mxu1 %v1125_v9 }
   0xd   :  { %882 = vmatpush3.msra.mxu1 %v1125_v9 }
   0xe   :  { %883 = vmatprep.subr.mxu1 %v1132_v10 }
   0xf   :  { %884 = vmatpush3.msra.mxu1 %v1132_v10 }
  0x10   :  { %885 = vmatprep.subr.mxu1 %v1139_v11 }
  0x11   :  { %886 = vmatpush3.msra.mxu1 %v1139_v11 }
  0x12   :  { %887 = vmatprep.subr.mxu1 %v1146_v12 }
  0x13   :  { %888 = vmatpush3.msra.mxu1 %v1146_v12 }
  0x14   :  { %889 = vmatprep.subr.mxu1 %v1153_v13 }
  0x15   :  { %890 = vmatpush3.msra.mxu1 %v1153_v13 }
  0x16   :  { %891 = vmatprep.subr.mxu1 %v1160_v14 }
  0x17   :  { %892 = vmatpush3.msra.mxu1 %v1160_v14 }
  0x18   :  { %893 = vmatprep.subr.mxu1 %v1167_v15 }
  0x19   :  { %894 = vmatpush3.msra.mxu1 %v1167_v15 }
  0x1a   :  { %895 = vmatprep.subr.mxu1 %v1175_v16 }
  0x1b   :  { %896 = vmatpush3.msra.mxu1 %v1175_v16 }
  0x1c   :  { %897 = vmatprep.subr.mxu1 %v1181_v17 }
  0x1d   :  { %898 = vmatpush3.msra.mxu1 %v1181_v17 }
  0x1e   :  { %899 = vmatprep.subr.mxu1 %v1188_v18 }
  0x1f   :  { %900 = vmatpush3.msra.mxu1 %v1188_v18 }
  0x20   :  { %901 = vmatprep.subr.mxu1 %v1228_v24 }
  0x21   :  { %902 = vmatpush3.msra.mxu1 %v1228_v24 }
  0x22   :  { %903 = vmatprep.subr.mxu1 %v1236_v25 }
  0x23   :  { %904 = vmatpush3.msra.mxu1 %v1236_v25 }
  0x24   :  { %905 = vmatprep.subr.mxu1 %v1245_v26 }
  0x25   :  { %906 = vmatpush3.msra.mxu1 %v1245_v26 }
  0x26   :  { %916 = vmatprep.subr.mxu1 %v1039_v1 }
  0x76   :  { %v56_v19 = vpop.permute.xlu0 %55 }
  0x7a   :  { %v58_v20 = vpop.permute.xlu0 %57 }
  0x7b   :  { %v60_v21 = vsel %vm59_vm3, %v56_v19, %v58_v20 }
  0x7c   :  { %v67_v22 = vsel %vm65_vm0, %v60_v21, 0 }
  0x7d   :  { %829 = vmatpush3.bf16.msra.mxu0 %v67_v22 }
  0x7e   :  { %840 = vmatprep.subr.mxu0 %v1100_v5 }
  0x80   :  { %831 = vmatmul.mubr.msk.bf16.vlgmr.msra.gmra.mxu0 %vm61_vm2, %v1020_v23 }
  0x81   :  { %841 = vmatpush3.msra.mxu0 %v1100_v5 }
  0x82   :  { %842 = vmatprep.subr.mxu0 %v1110_v7 }
  0x83   :  { %843 = vmatpush3.msra.mxu0 %v1110_v7 }
  0x84   :  { %844 = vmatprep.subr.mxu0 %v1118_v8 }
  0x85   :  { %845 = vmatpush3.msra.mxu0 %v1118_v8 }
  0x86   :  { %846 = vmatprep.subr.mxu0 %v1125_v9 }
  0x87   :  { %847 = vmatpush3.msra.mxu0 %v1125_v9 }
  0x88   :  { %848 = vmatprep.subr.mxu0 %v1132_v10 }
  0x89   :  { %849 = vmatpush3.msra.mxu0 %v1132_v10 }
  0x8a   :  { %850 = vmatprep.subr.mxu0 %v1139_v11 }
  0x8b   :  { %851 = vmatpush3.msra.mxu0 %v1139_v11 }
  0x8c   :  { %852 = vmatprep.subr.mxu0 %v1146_v12 }
  0x8d   :  { %853 = vmatpush3.msra.mxu0 %v1146_v12 }
  0x8e   :  { %854 = vmatprep.subr.mxu0 %v1153_v13 }
  0x8f   :  { %855 = vmatpush3.msra.mxu0 %v1153_v13 }
  0x90   :  { %856 = vmatprep.subr.mxu0 %v1160_v14 }
  0x91   :  { %857 = vmatpush3.msra.mxu0 %v1160_v14 }
  0x92   :  { %858 = vmatprep.subr.mxu0 %v1167_v15 }
  0x93   :  { %859 = vmatpush3.msra.mxu0 %v1167_v15 }
  0x94   :  { %860 = vmatprep.subr.mxu0 %v1175_v16 }
  0x95   :  { %861 = vmatpush3.msra.mxu0 %v1175_v16 }
  0x96   :  { %862 = vmatprep.subr.mxu0 %v1181_v17 }
  0x97   :  { %863 = vmatpush3.msra.mxu0 %v1181_v17 }
  0x98   :  { %864 = vmatprep.subr.mxu0 %v1188_v18 }
  0x99   :  { %865 = vmatpush3.msra.mxu0 %v1188_v18 }
  0x9a   :  { %866 = vmatprep.subr.mxu0 %v1228_v24 }
  0x9b   :  { %867 = vmatpush3.msra.mxu0 %v1228_v24 }
  0x9c   :  { %868 = vmatprep.subr.mxu0 %v1236_v25 }
  0x9d   :  { %869 = vmatpush3.msra.mxu0 %v1236_v25 }
  0x9e   :  { %870 = vmatprep.subr.mxu0 %v1245_v26 }
  0x9f   :  { %871 = vmatpush3.msra.mxu0 %v1245_v26 }
  0xc6   :  { %v155_v27 = vpop.f32.mrf.mxu1 }
  0xc8   :  { %v838_v28 = vpop.f32.mrf.mxu1 }
  0xca   :  { %v158_v29 = vpop.f32.mrf.mxu1 }
  0xcc   :  { %v839_v30 = vpop.f32.mrf.mxu1 }
 0x140   :  { %v103_v31 = vpop.f32.mrf.mxu0 }
 0x141   :  { %v156_v32 = vadd.f32 %v155_v27, %v103_v31 }
 0x142   :  { %v832_v33 = vpop.f32.mrf.mxu0 }
 0x143   :  { %872 = vmatprep.mubr.f32.mxu0 %v156_v32 }
 0x144   :  { %v106_v34 = vpop.f32.mrf.mxu0 }
 0x145   :  { %v159_v35 = vadd.f32 %v158_v29, %v106_v34  ;;  %v1022_v34 = vld [vmem:[%s1380_s2 + $0x8] ss:$0 sps:$4 sm:$0xff]  }
 0x146   :  { %v833_v36 = vpop.f32.mrf.mxu0 }
 0x147   :  { %873 = vmatmul.mubr.f32.vlgmr.msra.gmra.mxu0 %v159_v35 }
 0x148   :  { %912 = vmatprep.mubr.msk.bf16.mxu0 %vm61_vm2, %v1021_v59  ;;  %v704_v59 = vunpack.c.l.bf16 %v1082_v0 }
 0x207   :  { %v874_v38 = vpop.f32.mrf.mxu0 }
 0x208   :  { %v243_v41 = vmul.f32 0.035714287, %v874_v38 }
 0x209   :  { %v233_v39 = vpop.f32.mrf.mxu0 }
 0x20a   :  { %v242_v40 = vmul.f32 0.035714287, %v233_v39 }
 0x20c   :  { %246 = vperm.xlu1 %1004, %v242_v40  }
 0x210   :  { %251 = vperm.xlu1 %1004, %v243_v41  }
 0x214   :  { %358 = vperm.xlu1 %1004, %v163_v42  }
 0x218   :  { %1006 = vset.pattern.permute.xlu1 %v1043_v49 }
 0x219   :  { %368 = vperm.xlu1 %1006, %v163_v42  }
 0x21d   :  { %1007 = vset.pattern.permute.xlu1 %v1042_v37 }
 0x21e   :  { %353 = vperm.xlu1 %1007, %v162_v50  }
 0x287   :  { %v247_v43 = vpop.permute.xlu1 %246 }
 0x288   :  { %v1258_v44 = vsub.f32 %v156_v32, %v247_v43 }
 0x28a   :  { %v256_v45 = vmul.f32 %v1258_v44, %v1258_v44 }
 0x28b   :  { %v252_v46 = vpop.permute.xlu1 %251 }
 0x28c   :  { %v255_v47 = vsub.f32 %v159_v35, %v252_v46  ;;  %907 = vmatprep.mubr.f32.mxu1 %v256_v45 }
 0x28e   :  { %v257_v48 = vmul.f32 %v255_v47, %v255_v47 }
 0x28f   :  { %v359_v60 = vpop.permute.xlu1 %358 }
 0x290   :  { %908 = vmatmul.mubr.f32.vlgmr.msra.gmra.mxu1 %v257_v48 }
 0x291   :  { %917 = vmatpush3.msra.mxu1 %v1100_v5  ;;  %948 = vmatprep.mubr.msk.f32.mxu1 %vm1040_vm1, %v1039_v1 }
 0x292   :  { %918 = vmatprep.subr.mxu1 %v1039_v1 }
 0x293   :  { %919 = vmatpush3.msra.mxu1 %v1110_v7 }
 0x294   :  { %920 = vmatprep.subr.mxu1 %v1039_v1  ;;  %v369_v2 = vpop.permute.xlu1 %368 }
 0x295   :  { %921 = vmatpush3.msra.mxu1 %v1118_v8 }
 0x296   :  { %922 = vmatprep.subr.mxu1 %v1039_v1 }
 0x297   :  { %923 = vmatpush3.msra.mxu1 %v1125_v9 }
 0x298   :  { %924 = vmatprep.subr.mxu1 %v1039_v1 }
 0x299   :  { %925 = vmatpush3.msra.mxu1 %v1132_v10  ;;  %v354_v20 = vpop.permute.xlu1 %353 }
 0x29a   :  { %926 = vmatprep.subr.mxu1 %v1039_v1 }
 0x29b   :  { %927 = vmatpush3.msra.mxu1 %v1139_v11 }
 0x29c   :  { %928 = vmatprep.subr.mxu1 %v1039_v1 }
 0x29d   :  { %929 = vmatpush3.msra.mxu1 %v1146_v12 }
 0x29e   :  { %930 = vmatprep.subr.mxu1 %v1039_v1 }
 0x29f   :  { %931 = vmatpush3.msra.mxu1 %v1153_v13 }
 0x2a0   :  { %932 = vmatprep.subr.mxu1 %v1039_v1 }
 0x2a1   :  { %933 = vmatpush3.msra.mxu1 %v1160_v14 }
 0x2a2   :  { %934 = vmatprep.subr.mxu1 %v1039_v1 }
 0x2a3   :  { %935 = vmatpush3.msra.mxu1 %v1167_v15 }
 0x2a4   :  { %936 = vmatprep.subr.mxu1 %v1039_v1 }
 0x2a5   :  { %937 = vmatpush3.msra.mxu1 %v1175_v16 }
 0x2a6   :  { %938 = vmatprep.subr.mxu1 %v1039_v1 }
 0x2a7   :  { %939 = vmatpush3.msra.mxu1 %v1181_v17 }
 0x2a8   :  { %940 = vmatprep.subr.mxu1 %v1039_v1 }
 0x2a9   :  { %941 = vmatpush3.msra.mxu1 %v1188_v18 }
 0x2aa   :  { %942 = vmatprep.subr.mxu1 %v1039_v1 }
 0x2ab   :  { %943 = vmatpush3.msra.mxu1 %v1228_v24 }
 0x2ac   :  { %944 = vmatprep.subr.mxu1 %v1039_v1 }
 0x2ad   :  { %945 = vmatpush3.msra.mxu1 %v1236_v25 }
 0x2ae   :  { %946 = vmatprep.subr.mxu1 %v1039_v1 }
 0x2af   :  { %947 = vmatpush3.msra.mxu1 %v1245_v26 }
 0x350   :  { %v909_v51 = vpop.f32.mrf.mxu1 }
 0x351   :  { %v334_v52 = vmul.f32 0.035714287, %v909_v51 }
 0x352   :  { %v324_v53 = vpop.f32.mrf.mxu1 }
 0x353   :  { %v336_v54 = vadd.f32 1e-05, %v334_v52  ;;  %v333_v55 = vmul.f32 0.035714287, %v324_v53 }
 0x355   :  { %1023 = vrsqrt.f32 %v336_v54  ;;  %v335_v56 = vadd.f32 1e-05, %v333_v55 }
 0x357   :  { %1025 = vrsqrt.f32 %v335_v56 }
 0x362   :  { %v1024_v57 = vpop.eup %1023 }
 0x363   :  { %346 = vperm.xlu0 %1005, %v1024_v57  }
 0x364   :  { %v1026_v58 = vpop.eup %1025 }
 0x367   :  { %341 = vperm.xlu0 %1005, %v1026_v58  }
 0x36b   :  { %1008 = vset.pattern.permute.xlu0 %v1043_v49 }
 0x36c   :  { %364 = vperm.xlu0 %1008, %v162_v50  }
 0x370   :  { %1009 = vset.pattern.permute.xlu0 %v1042_v37 }
 0x3de   :  { %v347_v61 = vpop.permute.xlu0 %346 }
 0x3df   :  { %v350_v62 = vmul.f32 %v347_v61, %v255_v47 }
 0x3e1   :  { %v362_v63 = vmul.f32 %v359_v60, %v350_v62  ;;  %v705_v60 = vunpack.c.h.bf16 %v1082_v0 }
 0x3e2   :  { %v342_v6 = vpop.permute.xlu0 %341 }
 0x3e3   :  { %v372_v3 = vadd.f32 %v369_v2, %v362_v63  ;;  %v349_v19 = vmul.f32 %v342_v6, %v1258_v44  ;;  %v1012_v61 = vpack.i.bf16 %v705_v60, %v704_v59 }
 0x3e5   :  { %v733_v4 = vmul.f32 -1.442695, %v372_v3  ;;  %v361_v21 = vmul.f32 %v354_v20, %v349_v19 }
 0x3e7   :  { %1027 = vpow2.f32 %v733_v4  ;;  %v365_v22 = vpop.permute.xlu0 %364 }
 0x3e8   :  { %v371_v23 = vadd.f32 %v365_v22, %v361_v21 }
 0x3ea   :  { %1029 = vtanh.f32 %v371_v23 }
 0x3f4   :  { %v1028_v27 = vpop.eup %1027 }
 0x3f5   :  { %v377_v28 = vadd.f32 1.0, %v1028_v27 }
 0x3f7   :  { %1031 = vrcp.f32 %v377_v28  ;;  %v1030_v29 = vpop.eup %1029 }
 0x404   :  { %v1032_v30 = vpop.eup %1031 }
 0x405   :  { %v380_v31 = vmul.f32 %v1032_v30, %v1030_v29 }
 0x407   :  { %v381_v32 = vpack.c.bf16 %v380_v31, %v380_v31 }
 0x409   :  { %998 = vmatprep.subr.msk.bf16.mxu0 %vm65_vm0, %v381_v32  ;;  %v400_v33 = vsel %vm65_vm0, %v381_v32, 0 }
 0x40a   :  { %911 = vmatpush3.bf16.msra.mxu0 %v400_v33 }
 0x40b   :  { %957 = vmatprep.subr.mxu0 %v1039_v1 }
 0x40d   :  { %913 = vmatmul.mubr.msk.bf16.vlgmr.msra.gmra.mxu0 %vm61_vm2, %v1022_v34 }
 0x40e   :  { %958 = vmatpush3.msra.mxu0 %v1100_v5  ;;  %989 = vmatprep.mubr.msk.f32.mxu0 %vm1040_vm1, %v1039_v1 }
 0x40f   :  { %959 = vmatprep.subr.mxu0 %v1039_v1 }
 0x410   :  { %960 = vmatpush3.msra.mxu0 %v1110_v7 }
 0x411   :  { %961 = vmatprep.subr.mxu0 %v1039_v1 }
 0x412   :  { %962 = vmatpush3.msra.mxu0 %v1118_v8 }
 0x413   :  { %963 = vmatprep.subr.mxu0 %v1039_v1 }
 0x414   :  { %964 = vmatpush3.msra.mxu0 %v1125_v9 }
 0x415   :  { %965 = vmatprep.subr.mxu0 %v1039_v1 }
 0x416   :  { %966 = vmatpush3.msra.mxu0 %v1132_v10 }
 0x417   :  { %967 = vmatprep.subr.mxu0 %v1039_v1 }
 0x418   :  { %968 = vmatpush3.msra.mxu0 %v1139_v11 }
 0x419   :  { %969 = vmatprep.subr.mxu0 %v1039_v1 }
 0x41a   :  { %970 = vmatpush3.msra.mxu0 %v1146_v12 }
 0x41b   :  { %971 = vmatprep.subr.mxu0 %v1039_v1 }
 0x41c   :  { %972 = vmatpush3.msra.mxu0 %v1153_v13 }
 0x41d   :  { %973 = vmatprep.subr.mxu0 %v1039_v1 }
 0x41e   :  { %974 = vmatpush3.msra.mxu0 %v1160_v14 }
 0x41f   :  { %975 = vmatprep.subr.mxu0 %v1039_v1 }
 0x420   :  { %976 = vmatpush3.msra.mxu0 %v1167_v15 }
 0x421   :  { %977 = vmatprep.subr.mxu0 %v1039_v1 }
 0x422   :  { %978 = vmatpush3.msra.mxu0 %v1175_v16 }
 0x423   :  { %979 = vmatprep.subr.mxu0 %v1039_v1 }
 0x424   :  { %980 = vmatpush3.msra.mxu0 %v1181_v17  ;;  %v164_v17 = vld [vmem:[%s1379_s3 + $0x10] sm:$0xff] }
 0x425   :  { %981 = vmatprep.subr.mxu0 %v1039_v1 }
 0x426   :  { %982 = vmatpush3.msra.mxu0 %v1188_v18 }
 0x427   :  { %983 = vmatprep.subr.mxu0 %v1039_v1 }
 0x428   :  { %984 = vmatpush3.msra.mxu0 %v1228_v24 }
 0x429   :  { %985 = vmatprep.subr.mxu0 %v1039_v1 }
 0x42a   :  { %986 = vmatpush3.msra.mxu0 %v1236_v25  ;;  %v166_v25 = vld [vmem:[%s1379_s3 + $0x20] sm:$0xff] }
 0x42b   :  { %987 = vmatprep.subr.mxu0 %v1039_v1 }
 0x42c   :  { %988 = vmatpush3.msra.mxu0 %v1245_v26  ;;  %v165_v26 = vld [vmem:[%s1379_s3 + $0x18] sm:$0xff] }
 0x4cd   :  { %v914_v5 = vpop.f32.mrf.mxu0 }
 0x4cf   :  { %v436_v7 = vpop.f32.mrf.mxu0 }
 0x4d0   :  { %949 = vmatmul.mubr.f32.vlgmr.msra.gmra.mxu1 %v436_v7 }
 0x4d1   :  { %v915_v8 = vpop.f32.mrf.mxu0  ;;  %951 = vmatprep.mubr.msk.f32.mxu1 %vm1040_vm1, %v1039_v1 }
 0x4d3   :  { %v439_v9 = vpop.f32.mrf.mxu0 }
 0x4d4   :  { %952 = vmatmul.mubr.f32.gmra.mxu1 %v439_v9 }
 0x4d5   :  { %954 = vmatprep.mubr.msk.f32.mxu1 %vm1040_vm1, %v1039_v1 }
 0x4d8   :  { %955 = vmatmul.mubr.f32.gmra.mxu1 %v914_v5 }
 0x590   :  { %v516_v10 = vpop.f32.mrf.mxu1 }
 0x591   :  { %v530_v11 = vmul.f32 0.035714287, %v516_v10 }
 0x592   :  { %v950_v12 = vpop.f32.mrf.mxu1 }
 0x593   :  { %535 = vperm.xlu1 %1007, %v530_v11  }
 0x594   :  { %v521_v13 = vpop.f32.mrf.mxu1 }
 0x595   :  { %v531_v14 = vmul.f32 0.035714287, %v521_v13 }
 0x596   :  { %v953_v15 = vpop.f32.mrf.mxu1 }
 0x597   :  { %540 = vperm.xlu1 %1007, %v531_v14  }
 0x598   :  { %v526_v16 = vpop.f32.mrf.mxu1 }
 0x599   :  { %v532_v18 = vmul.f32 0.035714287, %v526_v16 }
 0x59a   :  { %v956_v24 = vpop.f32.mrf.mxu1 }
 0x59b   :  { %663 = vperm.xlu1 %1007, %v164_v17   ;;  %545 = vperm.xlu0 %1009, %v532_v18  }
 0x59f   :  { %673 = vperm.xlu1 %1007, %v166_v25   ;;  %668 = vperm.xlu0 %1009, %v165_v26  }
 0x60e   :  { %v536_v35 = vpop.permute.xlu1 %535 }
 0x60f   :  { %v548_v36 = vsub.f32 %v436_v7, %v536_v35 }
 0x611   :  { %v551_v37 = vmul.f32 %v548_v36, %v548_v36 }
 0x612   :  { %v541_v38 = vpop.permute.xlu1 %540 }
 0x613   :  { %v549_v39 = vsub.f32 %v439_v9, %v541_v38  ;;  %990 = vmatmul.mubr.f32.vlgmr.msra.gmra.mxu0 %v551_v37 }
 0x614   :  { %992 = vmatprep.mubr.msk.f32.mxu0 %vm1040_vm1, %v1039_v1 }
 0x615   :  { %v552_v40 = vmul.f32 %v549_v39, %v549_v39 }
 0x616   :  { %v546_v41 = vpop.permute.xlu0 %545  ;;  %v664_v62 = vpop.permute.xlu1 %663 }
 0x617   :  { %v550_v42 = vsub.f32 %v914_v5, %v546_v41  ;;  %993 = vmatmul.mubr.f32.gmra.mxu0 %v552_v40 }
 0x618   :  { %995 = vmatprep.mubr.msk.f32.mxu0 %vm1040_vm1, %v1039_v1 }
 0x619   :  { %v553_v43 = vmul.f32 %v550_v42, %v550_v42 }
 0x61a   :  { %v674_v63 = vpop.permute.xlu1 %673  ;;  %v669_v3 = vpop.permute.xlu0 %668 }
 0x61b   :  { %996 = vmatmul.mubr.f32.gmra.mxu0 %v553_v43 }
 0x6d3   :  { %v620_v44 = vpop.f32.mrf.mxu0 }
 0x6d4   :  { %v634_v45 = vmul.f32 0.035714287, %v620_v44 }
 0x6d5   :  { %v991_v46 = vpop.f32.mrf.mxu0 }
 0x6d6   :  { %v637_v47 = vadd.f32 1e-05, %v634_v45 }
 0x6d7   :  { %v625_v48 = vpop.f32.mrf.mxu0 }
 0x6d8   :  { %1033 = vrsqrt.f32 %v637_v47  ;;  %v635_v50 = vmul.f32 0.035714287, %v625_v48 }
 0x6d9   :  { %v994_v51 = vpop.f32.mrf.mxu0 }
 0x6da   :  { %v638_v52 = vadd.f32 1e-05, %v635_v50 }
 0x6db   :  { %v630_v53 = vpop.f32.mrf.mxu0 }
 0x6dc   :  { %1035 = vrsqrt.f32 %v638_v52  ;;  %v636_v54 = vmul.f32 0.035714287, %v630_v53 }
 0x6dd   :  { %v997_v55 = vpop.f32.mrf.mxu0 }
 0x6de   :  { %v639_v56 = vadd.f32 1e-05, %v636_v54 }
 0x6e0   :  { %1037 = vrsqrt.f32 %v639_v56 }
 0x6e5   :  { %v1034_v57 = vpop.eup %1033 }
 0x6e6   :  { %645 = vperm.xlu1 %1007, %v1034_v57  }
 0x6e9   :  { %v1036_v1 = vpop.eup %1035 }
 0x6ea   :  { %650 = vperm.xlu1 %1007, %v1036_v1  }
 0x6ed   :  { %v1038_v58 = vpop.eup %1037 }
 0x6ee   :  { %1011 = vset.pattern.permute.xlu1 %v1043_v49  ;;  %655 = vperm.xlu0 %1009, %v1038_v58  }
 0x6ef   :  { %684 = vperm.xlu1 %1011, %v165_v26  }
 0x6f2   :  { %1010 = vset.pattern.permute.xlu0 %v1043_v49 }
 0x6f3   :  { %688 = vperm.xlu1 %1011, %v166_v25   ;;  %680 = vperm.xlu0 %1010, %v164_v17  }
 0x6f7   :  { %1013 = vrot.lane.b32.xlu0 %v1012_v61, %s1041_s26 }
 0x761   :  { %v646_v2 = vpop.permute.xlu1 %645 }
 0x762   :  { %v658_v19 = vmul.f32 %v646_v2, %v548_v36 }
 0x764   :  { %v676_v27 = vmul.f32 %v664_v62, %v658_v19 }
 0x765   :  { %v651_v4 = vpop.permute.xlu1 %650 }
 0x766   :  { %v659_v6 = vmul.f32 %v651_v4, %v549_v39 }
 0x768   :  { %v677_v22 = vmul.f32 %v669_v3, %v659_v6 }
 0x769   :  { %v656_v20 = vpop.permute.xlu0 %655 }
 0x76a   :  { %v685_v21 = vpop.permute.xlu1 %684  ;;  %v660_v23 = vmul.f32 %v656_v20, %v550_v42 }
 0x76b   :  { %v692_v28 = vadd.f32 %v685_v21, %v677_v22 }
 0x76c   :  { %v678_v29 = vmul.f32 %v674_v63, %v660_v23 }
 0x76e   :  { %v681_v0 = vpop.permute.xlu0 %680  ;;  %v689_v30 = vpop.permute.xlu1 %688 }
 0x76f   :  { %v691_v49 = vadd.f32 %v681_v0, %v676_v27  ;;  %v693_v5 = vadd.f32 %v689_v30, %v678_v29 }
 0x771   :  { %v745_v31 = vpack.c.bf16 %v692_v28, %v691_v49 }
 0x772   :  { %v1014_v32 = vpop.permute.xlu0 %1013 }
 0x773   :  { %746 = vst [vmem:[%s1381_s6] sm:$0xff] %v745_v31   ;;  %v1016_v33 = vunpack.i.h.bf16 %v1014_v32  ;;  %v1015_v34 = vunpack.i.l.bf16 %v1014_v32 }
 0x775   :  { %v713_v7 = vsel %vm59_vm3, %v1015_v34, %v1016_v33 }
 0x776   :  { %v715_v8 = vadd.f32 %v713_v7, %v693_v5 }
 0x778   :  { %716 = vst [vmem:[%s1382_s5] sm:$0xff] %v715_v8 }

</bundles_post_ra>
